<compile_context>
chip_gen: v6e
topology: v6e:2x2x1
jax: 0.10.0
libtpu: 0.0.40
codegen_flags: <defaults>
</compile_context>

<pallas_src>
import functools
import math

import jax
import jax.numpy as jnp
from jax.experimental import pallas as pl
from jax.experimental.pallas import tpu as pltpu


# ----------------------------------------------------------------------------
# Kernel
# ----------------------------------------------------------------------------
def _enhance_kernel(x_ref, wdec_ref, bdec_ref, wqkv_ref, bqkv_ref, out_ref, *,
                    B, T, D, sr, d, scale):
    # x_ref: (B, T, D); wdec: (D, D) block-diag; bdec: (1, D);
    # wqkv: (D, 3D) block-diag per Q|K|V; bqkv: (1, 3D); out: (B, T, D).
    x = x_ref[...].reshape(B * T, D)                       # collapse batch+seq rows

    # --- Decomposer: block-diagonal weight == per-split Linear(d, d) + ReLU --
    h = jnp.dot(x, wdec_ref[...], preferred_element_type=jnp.float32) + bdec_ref[...]
    h = jnp.maximum(h, 0.0)                                # (B*T, D)

    # --- Fused Q|K|V projection (one MXU push instead of 3 * sr) -------------
    qkv = jnp.dot(h, wqkv_ref[...], preferred_element_type=jnp.float32) + bqkv_ref[...]

    h3 = h.reshape(B, T, D)
    qkv3 = qkv.reshape(B, T, 3 * D)

    # --- DecomposeAttention (v1): per-split single-head attention + residual -
    outs = []
    for s in range(sr):                                    # static unroll, sr tiny
        lo = s * d
        q_s = qkv3[:, :, lo:lo + d]                        # (B, T, d)
        k_s = qkv3[:, :, D + lo:D + lo + d]
        v_s = qkv3[:, :, 2 * D + lo:2 * D + lo + d]
        h_s = h3[:, :, lo:lo + d]

        # Contract last dims directly (no materialized k.T).
        scores = jnp.einsum('bqd,bkd->bqk', q_s, k_s,
                            preferred_element_type=jnp.float32) * scale
        scores = scores - jnp.max(scores, axis=-1, keepdims=True)
        p = jnp.exp(scores)
        denom = jnp.sum(p, axis=-1, keepdims=True)
        p = p * pl.reciprocal(denom, approx=True)          # EUP slot, ~free
        attn = jnp.einsum('bqk,bkd->bqd', p, v_s,
                          preferred_element_type=jnp.float32)
        outs.append(attn + h_s)                            # residual

    out = jnp.concatenate(outs, axis=-1)                   # (B, T, D) lane-dense
    out_ref[...] = out.astype(out_ref.dtype)


# ----------------------------------------------------------------------------
# pallas_call wrapper (one call per modality branch)
# ----------------------------------------------------------------------------
def _enhance_branch(x, params, split_rate):
    """x: (B, T, D) float32 -> enhanced (B, T, D) float32. One kernel call."""
    B, T, D = x.shape
    assert D % split_rate == 0, "feature dim must be divisible by split_rate"
    d = D // split_rate
    wdec_bd, bdec, wqkv_bd, bqkv = params

    kernel = functools.partial(_enhance_kernel, B=B, T=T, D=D, sr=split_rate,
                               d=d, scale=1.0 / math.sqrt(d))

    return pl.pallas_call(
        kernel,
        out_shape=jax.ShapeDtypeStruct((B, T, D), jnp.float32),
        grid_spec=pltpu.PrefetchScalarGridSpec(
            num_scalar_prefetch=0,
            grid=(1,),                                     # single step: no per-step
            in_specs=[                                     # weight re-DMA / pipeline
                pl.BlockSpec((B, T, D), lambda i: (0, 0, 0)),       # overhead
                pl.BlockSpec((D, D), lambda i: (0, 0)),
                pl.BlockSpec((1, D), lambda i: (0, 0)),
                pl.BlockSpec((D, 3 * D), lambda i: (0, 0)),
                pl.BlockSpec((1, 3 * D), lambda i: (0, 0)),
            ],
            out_specs=pl.BlockSpec((B, T, D), lambda i: (0, 0, 0)),
        ),
        compiler_params=pltpu.CompilerParams(
            dimension_semantics=("arbitrary",)),
    )(x, wdec_bd, bdec, wqkv_bd, bqkv)


# ----------------------------------------------------------------------------
# Parameter construction (per-split weights packed into block-diag / fused)
# ----------------------------------------------------------------------------
def _block_diag(w):
    """(sr, d, d) per-split weights -> (sr*d, sr*d) block-diagonal matrix."""
    sr, d, _ = w.shape
    D = sr * d
    out = jnp.zeros((D, D), w.dtype)
    for s in range(sr):
        out = out.at[s * d:(s + 1) * d, s * d:(s + 1) * d].set(w[s])
    return out


def _init_branch_params(key, split_rate, d):
    """Deterministic per-split weights; returns (packed, raw) parameter sets."""
    keys = jax.random.split(key, 8)
    scale = 1.0 / math.sqrt(d)
    D = split_rate * d
    wdec = jax.random.normal(keys[0], (split_rate, d, d), jnp.float32) * scale
    bdec = jax.random.normal(keys[1], (split_rate, 1, d), jnp.float32) * 0.01
    wq = jax.random.normal(keys[2], (split_rate, d, d), jnp.float32) * scale
    bq = jax.random.normal(keys[3], (split_rate, 1, d), jnp.float32) * 0.01
    wk = jax.random.normal(keys[4], (split_rate, d, d), jnp.float32) * scale
    bk = jax.random.normal(keys[5], (split_rate, 1, d), jnp.float32) * 0.01
    wv = jax.random.normal(keys[6], (split_rate, d, d), jnp.float32) * scale
    bv = jax.random.normal(keys[7], (split_rate, 1, d), jnp.float32) * 0.01

    # Packed: block-diagonal decomposer weight, fused block-diagonal Q|K|V.
    wdec_bd = _block_diag(wdec)                            # (D, D)
    bdec_f = bdec.reshape(1, D)                            # split-major flatten
    wqkv_bd = jnp.concatenate(
        [_block_diag(wq), _block_diag(wk), _block_diag(wv)], axis=1)   # (D, 3D)
    bqkv_f = jnp.concatenate(
        [bq.reshape(1, D), bk.reshape(1, D), bv.reshape(1, D)], axis=1)  # (1, 3D)

    packed = (wdec_bd, bdec_f, wqkv_bd, bqkv_f)
    raw = (wdec, bdec, wq, bq, wk, bk, wv, bv)
    return packed, raw


# ----------------------------------------------------------------------------
# Pure-JAX reference (per-split, mirrors the PyTorch interpretation)
# ----------------------------------------------------------------------------
def _reference_branch(x, raw, split_rate):
    wdec, bdec, wq, bq, wk, bk, wv, bv = raw
    B, T, D = x.shape
    d = D // split_rate
    outs = []
    for s in range(split_rate):
        xs = x[:, :, s * d:(s + 1) * d]                                  # (B, T, d)
        hs = jax.nn.relu(jnp.einsum('btd,de->bte', xs, wdec[s]) + bdec[s])
        q = jnp.einsum('btd,de->bte', hs, wq[s]) + bq[s]
        k = jnp.einsum('btd,de->bte', hs, wk[s]) + bk[s]
        v = jnp.einsum('btd,de->bte', hs, wv[s]) + bv[s]
        scores = jnp.einsum('bqd,bkd->bqk', q, k) / math.sqrt(d)
        p = jax.nn.softmax(scores, axis=-1)
        outs.append(jnp.einsum('bqk,bkd->bqd', p, v) + hs)
    return jnp.concatenate(outs, axis=-1)


# ----------------------------------------------------------------------------
# Module wrapper
# ----------------------------------------------------------------------------
def _forward(vision, audio, v_params, a_params, *, v_sr, a_sr):
    enhanced_v = _enhance_branch(vision, v_params, v_sr)
    enhanced_a = _enhance_branch(audio, a_params, a_sr)
    return enhanced_v, enhanced_a


class EnhanceNetV1Pallas:
    """JAX/Pallas equivalent of EnhanceNet_v1.forward(vision, audio)."""

    def __init__(self, key, v_dim, a_dim, v_sr, a_sr):
        kv, ka = jax.random.split(key)
        self.v_sr, self.a_sr = v_sr, a_sr
        self.v_params, self.v_raw = _init_branch_params(kv, v_sr, v_dim // v_sr)
        self.a_params, self.a_raw = _init_branch_params(ka, a_sr, a_dim // a_sr)
        # Both branches under one jit so dispatch / DMA of the two tiny
        # pallas_calls overlap.
        self._fwd = jax.jit(functools.partial(_forward, v_sr=v_sr, a_sr=a_sr))

    def __call__(self, vision, audio):
        return self._fwd(vision, audio, self.v_params, self.a_params)

    def reference(self, vision, audio):
        return (_reference_branch(vision, self.v_raw, self.v_sr),
                _reference_branch(audio, self.a_raw, self.a_sr))


if __name__ == "__main__":
    key = jax.random.PRNGKey(0)
    k_v, k_a, k_p = jax.random.split(key, 3)

    B, T = 2, 8
    Dv, Da = 32, 16
    v_sr, a_sr = 2, 2      # args['split_rate'] = {'vision': 2, 'audio': 2}

    vision = jax.random.normal(k_v, (B, T, Dv), jnp.float32)
    audio = jax.random.normal(k_a, (B, T, Da), jnp.float32)

    net = EnhanceNetV1Pallas(k_p, Dv, Da, v_sr, a_sr)
    enhanced_v, enhanced_a = net(vision, audio)
    jax.block_until_ready((enhanced_v, enhanced_a))

    assert enhanced_v.shape == (B, T, Dv)
    assert enhanced_a.shape == (B, T, Da)
    assert jnp.all(jnp.isfinite(enhanced_v)) and jnp.all(jnp.isfinite(enhanced_a))

    # Correctness vs. pure-JAX per-split reference (loose tol covers the
    # approximate EUP reciprocal and MXU accumulation-order differences).
    ref_v, ref_a = net.reference(vision, audio)
    assert jnp.allclose(enhanced_v, ref_v, atol=5e-2, rtol=5e-2)
    assert jnp.allclose(enhanced_a, ref_a, atol=5e-2, rtol=5e-2)

    print("KERNEL_OK")
</pallas_src>

<mosaic_0001>
module attributes {stable_mosaic.version = 11 : i64} {
  func.func @_enhance_kernel(%arg0: i32, %arg1: memref<2x8x32xf32, #tpu.memory_space<vmem>>, %arg2: memref<32x32xf32, #tpu.memory_space<vmem>>, %arg3: memref<1x32xf32, #tpu.memory_space<vmem>>, %arg4: memref<32x96xf32, #tpu.memory_space<vmem>>, %arg5: memref<1x96xf32, #tpu.memory_space<vmem>>, %arg6: memref<2x8x32xf32, #tpu.memory_space<vmem>>) attributes {dimension_semantics = [#tpu.dimension_semantics<arbitrary>], iteration_bounds = array<i64: 1>, scalar_prefetch = 0 : i64, scratch_operands = 0 : i64, tpu.core_type = #tpu.core_type<tc>, window_params = [{pipeline_mode = #tpu.pipeline_mode<synchronous>, transform_indices = @transform_0, window_bounds = array<i64: 2, 8, 32>}, {pipeline_mode = #tpu.pipeline_mode<synchronous>, transform_indices = @transform_1, window_bounds = array<i64: 32, 32>}, {pipeline_mode = #tpu.pipeline_mode<synchronous>, transform_indices = @transform_2, window_bounds = array<i64: 1, 32>}, {pipeline_mode = #tpu.pipeline_mode<synchronous>, transform_indices = @transform_3, window_bounds = array<i64: 32, 96>}, {pipeline_mode = #tpu.pipeline_mode<synchronous>, transform_indices = @transform_4, window_bounds = array<i64: 1, 96>}, {pipeline_mode = #tpu.pipeline_mode<synchronous>, transform_indices = @transform_5, window_bounds = array<i64: 2, 8, 32>}]} {
    %c0 = arith.constant 0 : index
    %c0_0 = arith.constant 0 : index
    %c0_1 = arith.constant 0 : index
    %0 = vector.load %arg1[%c0, %c0_0, %c0_1] : memref<2x8x32xf32, #tpu.memory_space<vmem>>, vector<2x8x32xf32>
    %1 = vector.shape_cast %0 : vector<2x8x32xf32> to vector<16x32xf32>
    %c0_2 = arith.constant 0 : index
    %c0_3 = arith.constant 0 : index
    %2 = vector.load %arg2[%c0_2, %c0_3] : memref<32x32xf32, #tpu.memory_space<vmem>>, vector<32x32xf32>
    %cst = arith.constant dense<0.000000e+00> : vector<16x32xf32>
    %3 = tpu.matmul %1, %2, %cst {dimension_numbers = #tpu.dot_dimension_numbers<[1], [0], [0], [1], [0, 0, 1, 1], [], []>} : vector<16x32xf32>, vector<32x32xf32>, vector<16x32xf32> -> vector<16x32xf32>
    %c0_4 = arith.constant 0 : index
    %c0_5 = arith.constant 0 : index
    %4 = vector.load %arg3[%c0_4, %c0_5] : memref<1x32xf32, #tpu.memory_space<vmem>>, vector<1x32xf32>
    %5 = vector.broadcast %4 : vector<1x32xf32> to vector<16x32xf32>
    %6 = arith.addf %3, %5 : vector<16x32xf32>
    %cst_6 = arith.constant 0.000000e+00 : f32
    %7 = vector.broadcast %cst_6 : f32 to vector<16x32xf32>
    %8 = arith.maximumf %6, %7 : vector<16x32xf32>
    %c0_7 = arith.constant 0 : index
    %c0_8 = arith.constant 0 : index
    %9 = vector.load %arg4[%c0_7, %c0_8] : memref<32x96xf32, #tpu.memory_space<vmem>>, vector<32x96xf32>
    %cst_9 = arith.constant dense<0.000000e+00> : vector<16x96xf32>
    %10 = tpu.matmul %8, %9, %cst_9 {dimension_numbers = #tpu.dot_dimension_numbers<[1], [0], [0], [1], [0, 0, 1, 1], [], []>} : vector<16x32xf32>, vector<32x96xf32>, vector<16x96xf32> -> vector<16x96xf32>
    %c0_10 = arith.constant 0 : index
    %c0_11 = arith.constant 0 : index
    %11 = vector.load %arg5[%c0_10, %c0_11] : memref<1x96xf32, #tpu.memory_space<vmem>>, vector<1x96xf32>
    %12 = vector.broadcast %11 : vector<1x96xf32> to vector<16x96xf32>
    %13 = arith.addf %10, %12 : vector<16x96xf32>
    %14 = vector.shape_cast %8 : vector<16x32xf32> to vector<2x8x32xf32>
    %15 = vector.shape_cast %13 : vector<16x96xf32> to vector<2x8x96xf32>
    %16 = vector.extract_strided_slice %15 {offsets = [0, 0, 0], sizes = [2, 8, 16], strides = [1, 1, 1]} : vector<2x8x96xf32> to vector<2x8x16xf32>
    %17 = vector.extract_strided_slice %15 {offsets = [0, 0, 32], sizes = [2, 8, 16], strides = [1, 1, 1]} : vector<2x8x96xf32> to vector<2x8x16xf32>
    %18 = vector.extract_strided_slice %15 {offsets = [0, 0, 64], sizes = [2, 8, 16], strides = [1, 1, 1]} : vector<2x8x96xf32> to vector<2x8x16xf32>
    %19 = vector.extract_strided_slice %14 {offsets = [0, 0, 0], sizes = [2, 8, 16], strides = [1, 1, 1]} : vector<2x8x32xf32> to vector<2x8x16xf32>
    "tpu.trace_start"() <{level = 10 : i32, message = "bqd,bkd->bqk"}> : () -> ()
    %cst_12 = arith.constant dense<0.000000e+00> : vector<2x8x8xf32>
    %20 = tpu.matmul %16, %17, %cst_12 {dimension_numbers = #tpu.dot_dimension_numbers<[2], [2], [1], [1], [0, 0, 0, 1, 1, 1], [0], [0]>} : vector<2x8x16xf32>, vector<2x8x16xf32>, vector<2x8x8xf32> -> vector<2x8x8xf32>
    "tpu.trace_stop"() : () -> ()
    %cst_13 = arith.constant 2.500000e-01 : f32
    %21 = vector.broadcast %cst_13 : f32 to vector<2x8x8xf32>
    %22 = arith.mulf %20, %21 : vector<2x8x8xf32>
    %cst_14 = arith.constant dense<0xFF800000> : vector<2x8xf32>
    %23 = vector.multi_reduction <maximumf>, %22, %cst_14 [2] : vector<2x8x8xf32> to vector<2x8xf32>
    %24 = vector.shape_cast %23 : vector<2x8xf32> to vector<2x8x1xf32>
    %25 = vector.broadcast %24 : vector<2x8x1xf32> to vector<2x8x8xf32>
    %26 = arith.subf %22, %25 : vector<2x8x8xf32>
    %27 = math.exp %26 : vector<2x8x8xf32>
    %cst_15 = arith.constant dense<0.000000e+00> : vector<2x8xf32>
    %28 = vector.multi_reduction <add>, %27, %cst_15 [2] : vector<2x8x8xf32> to vector<2x8xf32>
    %29 = vector.shape_cast %28 : vector<2x8xf32> to vector<2x8x1xf32>
    %30 = tpu.reciprocal %29 {approx = true} : vector<2x8x1xf32> -> vector<2x8x1xf32>
    %31 = vector.broadcast %30 : vector<2x8x1xf32> to vector<2x8x8xf32>
    %32 = arith.mulf %27, %31 : vector<2x8x8xf32>
    "tpu.trace_start"() <{level = 10 : i32, message = "bqk,bkd->bqd"}> : () -> ()
    %cst_16 = arith.constant dense<0.000000e+00> : vector<2x8x16xf32>
    %33 = tpu.matmul %32, %18, %cst_16 {dimension_numbers = #tpu.dot_dimension_numbers<[2], [1], [1], [2], [0, 0, 0, 1, 1, 2], [0], [0]>} : vector<2x8x8xf32>, vector<2x8x16xf32>, vector<2x8x16xf32> -> vector<2x8x16xf32>
    "tpu.trace_stop"() : () -> ()
    %34 = arith.addf %33, %19 : vector<2x8x16xf32>
    %35 = vector.extract_strided_slice %15 {offsets = [0, 0, 16], sizes = [2, 8, 16], strides = [1, 1, 1]} : vector<2x8x96xf32> to vector<2x8x16xf32>
    %36 = vector.extract_strided_slice %15 {offsets = [0, 0, 48], sizes = [2, 8, 16], strides = [1, 1, 1]} : vector<2x8x96xf32> to vector<2x8x16xf32>
    %37 = vector.extract_strided_slice %15 {offsets = [0, 0, 80], sizes = [2, 8, 16], strides = [1, 1, 1]} : vector<2x8x96xf32> to vector<2x8x16xf32>
    %38 = vector.extract_strided_slice %14 {offsets = [0, 0, 16], sizes = [2, 8, 16], strides = [1, 1, 1]} : vector<2x8x32xf32> to vector<2x8x16xf32>
    "tpu.trace_start"() <{level = 10 : i32, message = "bqd,bkd->bqk"}> : () -> ()
    %cst_17 = arith.constant dense<0.000000e+00> : vector<2x8x8xf32>
    %39 = tpu.matmul %35, %36, %cst_17 {dimension_numbers = #tpu.dot_dimension_numbers<[2], [2], [1], [1], [0, 0, 0, 1, 1, 1], [0], [0]>} : vector<2x8x16xf32>, vector<2x8x16xf32>, vector<2x8x8xf32> -> vector<2x8x8xf32>
    "tpu.trace_stop"() : () -> ()
    %cst_18 = arith.constant 2.500000e-01 : f32
    %40 = vector.broadcast %cst_18 : f32 to vector<2x8x8xf32>
    %41 = arith.mulf %39, %40 : vector<2x8x8xf32>
    %cst_19 = arith.constant dense<0xFF800000> : vector<2x8xf32>
    %42 = vector.multi_reduction <maximumf>, %41, %cst_19 [2] : vector<2x8x8xf32> to vector<2x8xf32>
    %43 = vector.shape_cast %42 : vector<2x8xf32> to vector<2x8x1xf32>
    %44 = vector.broadcast %43 : vector<2x8x1xf32> to vector<2x8x8xf32>
    %45 = arith.subf %41, %44 : vector<2x8x8xf32>
    %46 = math.exp %45 : vector<2x8x8xf32>
    %cst_20 = arith.constant dense<0.000000e+00> : vector<2x8xf32>
    %47 = vector.multi_reduction <add>, %46, %cst_20 [2] : vector<2x8x8xf32> to vector<2x8xf32>
    %48 = vector.shape_cast %47 : vector<2x8xf32> to vector<2x8x1xf32>
    %49 = tpu.reciprocal %48 {approx = true} : vector<2x8x1xf32> -> vector<2x8x1xf32>
    %50 = vector.broadcast %49 : vector<2x8x1xf32> to vector<2x8x8xf32>
    %51 = arith.mulf %46, %50 : vector<2x8x8xf32>
    "tpu.trace_start"() <{level = 10 : i32, message = "bqk,bkd->bqd"}> : () -> ()
    %cst_21 = arith.constant dense<0.000000e+00> : vector<2x8x16xf32>
    %52 = tpu.matmul %51, %37, %cst_21 {dimension_numbers = #tpu.dot_dimension_numbers<[2], [1], [1], [2], [0, 0, 0, 1, 1, 2], [0], [0]>} : vector<2x8x8xf32>, vector<2x8x16xf32>, vector<2x8x16xf32> -> vector<2x8x16xf32>
    "tpu.trace_stop"() : () -> ()
    %53 = arith.addf %52, %38 : vector<2x8x16xf32>
    %54 = tpu.concatenate %34, %53 in 2 : vector<2x8x16xf32>, vector<2x8x16xf32> -> vector<2x8x32xf32>
    %c0_22 = arith.constant 0 : index
    %c0_23 = arith.constant 0 : index
    %c0_24 = arith.constant 0 : index
    %55 = vector.load %arg6[%c0_22, %c0_23, %c0_24] : memref<2x8x32xf32, #tpu.memory_space<vmem>>, vector<2x8x32xf32>
    tpu.vector_store %arg6[%c0_22, %c0_23, %c0_24], %54 {strides = array<i32>} : memref<2x8x32xf32, #tpu.memory_space<vmem>>, vector<2x8x32xf32>,
    return
  }
  func.func @transform_0(%arg0: i32) -> (i32, i32, i32) {
    %c0_i32 = arith.constant 0 : i32
    %c0_i32_0 = arith.constant 0 : i32
    %c0_i32_1 = arith.constant 0 : i32
    %c0_i32_2 = arith.constant 0 : i32
    return %c0_i32, %c0_i32_0, %c0_i32_1 : i32, i32, i32
  }
  func.func @transform_1(%arg0: i32) -> (i32, i32) {
    %c0_i32 = arith.constant 0 : i32
    %c0_i32_0 = arith.constant 0 : i32
    %c0_i32_1 = arith.constant 0 : i32
    return %c0_i32, %c0_i32_0 : i32, i32
  }
  func.func @transform_2(%arg0: i32) -> (i32, i32) {
    %c0_i32 = arith.constant 0 : i32
    %c0_i32_0 = arith.constant 0 : i32
    %c0_i32_1 = arith.constant 0 : i32
    return %c0_i32, %c0_i32_0 : i32, i32
  }
  func.func @transform_3(%arg0: i32) -> (i32, i32) {
    %c0_i32 = arith.constant 0 : i32
    %c0_i32_0 = arith.constant 0 : i32
    %c0_i32_1 = arith.constant 0 : i32
    return %c0_i32, %c0_i32_0 : i32, i32
  }
  func.func @transform_4(%arg0: i32) -> (i32, i32) {
    %c0_i32 = arith.constant 0 : i32
    %c0_i32_0 = arith.constant 0 : i32
    %c0_i32_1 = arith.constant 0 : i32
    return %c0_i32, %c0_i32_0 : i32, i32
  }
  func.func @transform_5(%arg0: i32) -> (i32, i32, i32) {
    %c0_i32 = arith.constant 0 : i32
    %c0_i32_0 = arith.constant 0 : i32
    %c0_i32_1 = arith.constant 0 : i32
    %c0_i32_2 = arith.constant 0 : i32
    return %c0_i32, %c0_i32_0, %c0_i32_1 : i32, i32, i32
  }
}

module attributes {stable_mosaic.version = 11 : i64} {
  func.func @_enhance_kernel(%arg0: i32, %arg1: memref<2x8x16xf32, #tpu.memory_space<vmem>>, %arg2: memref<16x16xf32, #tpu.memory_space<vmem>>, %arg3: memref<1x16xf32, #tpu.memory_space<vmem>>, %arg4: memref<16x48xf32, #tpu.memory_space<vmem>>, %arg5: memref<1x48xf32, #tpu.memory_space<vmem>>, %arg6: memref<2x8x16xf32, #tpu.memory_space<vmem>>) attributes {dimension_semantics = [#tpu.dimension_semantics<arbitrary>], iteration_bounds = array<i64: 1>, scalar_prefetch = 0 : i64, scratch_operands = 0 : i64, tpu.core_type = #tpu.core_type<tc>, window_params = [{pipeline_mode = #tpu.pipeline_mode<synchronous>, transform_indices = @transform_0, window_bounds = array<i64: 2, 8, 16>}, {pipeline_mode = #tpu.pipeline_mode<synchronous>, transform_indices = @transform_1, window_bounds = array<i64: 16, 16>}, {pipeline_mode = #tpu.pipeline_mode<synchronous>, transform_indices = @transform_2, window_bounds = array<i64: 1, 16>}, {pipeline_mode = #tpu.pipeline_mode<synchronous>, transform_indices = @transform_3, window_bounds = array<i64: 16, 48>}, {pipeline_mode = #tpu.pipeline_mode<synchronous>, transform_indices = @transform_4, window_bounds = array<i64: 1, 48>}, {pipeline_mode = #tpu.pipeline_mode<synchronous>, transform_indices = @transform_5, window_bounds = array<i64: 2, 8, 16>}]} {
    %c0 = arith.constant 0 : index
    %c0_0 = arith.constant 0 : index
    %c0_1 = arith.constant 0 : index
    %0 = vector.load %arg1[%c0, %c0_0, %c0_1] : memref<2x8x16xf32, #tpu.memory_space<vmem>>, vector<2x8x16xf32>
    %1 = vector.shape_cast %0 : vector<2x8x16xf32> to vector<16x16xf32>
    %c0_2 = arith.constant 0 : index
    %c0_3 = arith.constant 0 : index
    %2 = vector.load %arg2[%c0_2, %c0_3] : memref<16x16xf32, #tpu.memory_space<vmem>>, vector<16x16xf32>
    %cst = arith.constant dense<0.000000e+00> : vector<16x16xf32>
    %3 = tpu.matmul %1, %2, %cst {dimension_numbers = #tpu.dot_dimension_numbers<[1], [0], [0], [1], [0, 0, 1, 1], [], []>} : vector<16x16xf32>, vector<16x16xf32>, vector<16x16xf32> -> vector<16x16xf32>
    %c0_4 = arith.constant 0 : index
    %c0_5 = arith.constant 0 : index
    %4 = vector.load %arg3[%c0_4, %c0_5] : memref<1x16xf32, #tpu.memory_space<vmem>>, vector<1x16xf32>
    %5 = vector.broadcast %4 : vector<1x16xf32> to vector<16x16xf32>
    %6 = arith.addf %3, %5 : vector<16x16xf32>
    %cst_6 = arith.constant 0.000000e+00 : f32
    %7 = vector.broadcast %cst_6 : f32 to vector<16x16xf32>
    %8 = arith.maximumf %6, %7 : vector<16x16xf32>
    %c0_7 = arith.constant 0 : index
    %c0_8 = arith.constant 0 : index
    %9 = vector.load %arg4[%c0_7, %c0_8] : memref<16x48xf32, #tpu.memory_space<vmem>>, vector<16x48xf32>
    %cst_9 = arith.constant dense<0.000000e+00> : vector<16x48xf32>
    %10 = tpu.matmul %8, %9, %cst_9 {dimension_numbers = #tpu.dot_dimension_numbers<[1], [0], [0], [1], [0, 0, 1, 1], [], []>} : vector<16x16xf32>, vector<16x48xf32>, vector<16x48xf32> -> vector<16x48xf32>
    %c0_10 = arith.constant 0 : index
    %c0_11 = arith.constant 0 : index
    %11 = vector.load %arg5[%c0_10, %c0_11] : memref<1x48xf32, #tpu.memory_space<vmem>>, vector<1x48xf32>
    %12 = vector.broadcast %11 : vector<1x48xf32> to vector<16x48xf32>
    %13 = arith.addf %10, %12 : vector<16x48xf32>
    %14 = vector.shape_cast %8 : vector<16x16xf32> to vector<2x8x16xf32>
    %15 = vector.shape_cast %13 : vector<16x48xf32> to vector<2x8x48xf32>
    %16 = vector.extract_strided_slice %15 {offsets = [0, 0, 0], sizes = [2, 8, 8], strides = [1, 1, 1]} : vector<2x8x48xf32> to vector<2x8x8xf32>
    %17 = vector.extract_strided_slice %15 {offsets = [0, 0, 16], sizes = [2, 8, 8], strides = [1, 1, 1]} : vector<2x8x48xf32> to vector<2x8x8xf32>
    %18 = vector.extract_strided_slice %15 {offsets = [0, 0, 32], sizes = [2, 8, 8], strides = [1, 1, 1]} : vector<2x8x48xf32> to vector<2x8x8xf32>
    %19 = vector.extract_strided_slice %14 {offsets = [0, 0, 0], sizes = [2, 8, 8], strides = [1, 1, 1]} : vector<2x8x16xf32> to vector<2x8x8xf32>
    "tpu.trace_start"() <{level = 10 : i32, message = "bqd,bkd->bqk"}> : () -> ()
    %cst_12 = arith.constant dense<0.000000e+00> : vector<2x8x8xf32>
    %20 = tpu.matmul %16, %17, %cst_12 {dimension_numbers = #tpu.dot_dimension_numbers<[2], [2], [1], [1], [0, 0, 0, 1, 1, 1], [0], [0]>} : vector<2x8x8xf32>, vector<2x8x8xf32>, vector<2x8x8xf32> -> vector<2x8x8xf32>
    "tpu.trace_stop"() : () -> ()
    %cst_13 = arith.constant 0.353553385 : f32
    %21 = vector.broadcast %cst_13 : f32 to vector<2x8x8xf32>
    %22 = arith.mulf %20, %21 : vector<2x8x8xf32>
    %cst_14 = arith.constant dense<0xFF800000> : vector<2x8xf32>
    %23 = vector.multi_reduction <maximumf>, %22, %cst_14 [2] : vector<2x8x8xf32> to vector<2x8xf32>
    %24 = vector.shape_cast %23 : vector<2x8xf32> to vector<2x8x1xf32>
    %25 = vector.broadcast %24 : vector<2x8x1xf32> to vector<2x8x8xf32>
    %26 = arith.subf %22, %25 : vector<2x8x8xf32>
    %27 = math.exp %26 : vector<2x8x8xf32>
    %cst_15 = arith.constant dense<0.000000e+00> : vector<2x8xf32>
    %28 = vector.multi_reduction <add>, %27, %cst_15 [2] : vector<2x8x8xf32> to vector<2x8xf32>
    %29 = vector.shape_cast %28 : vector<2x8xf32> to vector<2x8x1xf32>
    %30 = tpu.reciprocal %29 {approx = true} : vector<2x8x1xf32> -> vector<2x8x1xf32>
    %31 = vector.broadcast %30 : vector<2x8x1xf32> to vector<2x8x8xf32>
    %32 = arith.mulf %27, %31 : vector<2x8x8xf32>
    "tpu.trace_start"() <{level = 10 : i32, message = "bqk,bkd->bqd"}> : () -> ()
    %cst_16 = arith.constant dense<0.000000e+00> : vector<2x8x8xf32>
    %33 = tpu.matmul %32, %18, %cst_16 {dimension_numbers = #tpu.dot_dimension_numbers<[2], [1], [1], [2], [0, 0, 0, 1, 1, 2], [0], [0]>} : vector<2x8x8xf32>, vector<2x8x8xf32>, vector<2x8x8xf32> -> vector<2x8x8xf32>
    "tpu.trace_stop"() : () -> ()
    %34 = arith.addf %33, %19 : vector<2x8x8xf32>
    %35 = vector.extract_strided_slice %15 {offsets = [0, 0, 8], sizes = [2, 8, 8], strides = [1, 1, 1]} : vector<2x8x48xf32> to vector<2x8x8xf32>
    %36 = vector.extract_strided_slice %15 {offsets = [0, 0, 24], sizes = [2, 8, 8], strides = [1, 1, 1]} : vector<2x8x48xf32> to vector<2x8x8xf32>
    %37 = vector.extract_strided_slice %15 {offsets = [0, 0, 40], sizes = [2, 8, 8], strides = [1, 1, 1]} : vector<2x8x48xf32> to vector<2x8x8xf32>
    %38 = vector.extract_strided_slice %14 {offsets = [0, 0, 8], sizes = [2, 8, 8], strides = [1, 1, 1]} : vector<2x8x16xf32> to vector<2x8x8xf32>
    "tpu.trace_start"() <{level = 10 : i32, message = "bqd,bkd->bqk"}> : () -> ()
    %cst_17 = arith.constant dense<0.000000e+00> : vector<2x8x8xf32>
    %39 = tpu.matmul %35, %36, %cst_17 {dimension_numbers = #tpu.dot_dimension_numbers<[2], [2], [1], [1], [0, 0, 0, 1, 1, 1], [0], [0]>} : vector<2x8x8xf32>, vector<2x8x8xf32>, vector<2x8x8xf32> -> vector<2x8x8xf32>
    "tpu.trace_stop"() : () -> ()
    %cst_18 = arith.constant 0.353553385 : f32
    %40 = vector.broadcast %cst_18 : f32 to vector<2x8x8xf32>
    %41 = arith.mulf %39, %40 : vector<2x8x8xf32>
    %cst_19 = arith.constant dense<0xFF800000> : vector<2x8xf32>
    %42 = vector.multi_reduction <maximumf>, %41, %cst_19 [2] : vector<2x8x8xf32> to vector<2x8xf32>
    %43 = vector.shape_cast %42 : vector<2x8xf32> to vector<2x8x1xf32>
    %44 = vector.broadcast %43 : vector<2x8x1xf32> to vector<2x8x8xf32>
    %45 = arith.subf %41, %44 : vector<2x8x8xf32>
    %46 = math.exp %45 : vector<2x8x8xf32>
    %cst_20 = arith.constant dense<0.000000e+00> : vector<2x8xf32>
    %47 = vector.multi_reduction <add>, %46, %cst_20 [2] : vector<2x8x8xf32> to vector<2x8xf32>
    %48 = vector.shape_cast %47 : vector<2x8xf32> to vector<2x8x1xf32>
    %49 = tpu.reciprocal %48 {approx = true} : vector<2x8x1xf32> -> vector<2x8x1xf32>
    %50 = vector.broadcast %49 : vector<2x8x1xf32> to vector<2x8x8xf32>
    %51 = arith.mulf %46, %50 : vector<2x8x8xf32>
    "tpu.trace_start"() <{level = 10 : i32, message = "bqk,bkd->bqd"}> : () -> ()
    %cst_21 = arith.constant dense<0.000000e+00> : vector<2x8x8xf32>
    %52 = tpu.matmul %51, %37, %cst_21 {dimension_numbers = #tpu.dot_dimension_numbers<[2], [1], [1], [2], [0, 0, 0, 1, 1, 2], [0], [0]>} : vector<2x8x8xf32>, vector<2x8x8xf32>, vector<2x8x8xf32> -> vector<2x8x8xf32>
    "tpu.trace_stop"() : () -> ()
    %53 = arith.addf %52, %38 : vector<2x8x8xf32>
    %54 = tpu.concatenate %34, %53 in 2 : vector<2x8x8xf32>, vector<2x8x8xf32> -> vector<2x8x16xf32>
    %c0_22 = arith.constant 0 : index
    %c0_23 = arith.constant 0 : index
    %c0_24 = arith.constant 0 : index
    %55 = vector.load %arg6[%c0_22, %c0_23, %c0_24] : memref<2x8x16xf32, #tpu.memory_space<vmem>>, vector<2x8x16xf32>
    tpu.vector_store %arg6[%c0_22, %c0_23, %c0_24], %54 {strides = array<i32>} : memref<2x8x16xf32, #tpu.memory_space<vmem>>, vector<2x8x16xf32>,
    return
  }
  func.func @transform_0(%arg0: i32) -> (i32, i32, i32) {
    %c0_i32 = arith.constant 0 : i32
    %c0_i32_0 = arith.constant 0 : i32
    %c0_i32_1 = arith.constant 0 : i32
    %c0_i32_2 = arith.constant 0 : i32
    return %c0_i32, %c0_i32_0, %c0_i32_1 : i32, i32, i32
  }
  func.func @transform_1(%arg0: i32) -> (i32, i32) {
    %c0_i32 = arith.constant 0 : i32
    %c0_i32_0 = arith.constant 0 : i32
    %c0_i32_1 = arith.constant 0 : i32
    return %c0_i32, %c0_i32_0 : i32, i32
  }
  func.func @transform_2(%arg0: i32) -> (i32, i32) {
    %c0_i32 = arith.constant 0 : i32
    %c0_i32_0 = arith.constant 0 : i32
    %c0_i32_1 = arith.constant 0 : i32
    return %c0_i32, %c0_i32_0 : i32, i32
  }
  func.func @transform_3(%arg0: i32) -> (i32, i32) {
    %c0_i32 = arith.constant 0 : i32
    %c0_i32_0 = arith.constant 0 : i32
    %c0_i32_1 = arith.constant 0 : i32
    return %c0_i32, %c0_i32_0 : i32, i32
  }
  func.func @transform_4(%arg0: i32) -> (i32, i32) {
    %c0_i32 = arith.constant 0 : i32
    %c0_i32_0 = arith.constant 0 : i32
    %c0_i32_1 = arith.constant 0 : i32
    return %c0_i32, %c0_i32_0 : i32, i32
  }
  func.func @transform_5(%arg0: i32) -> (i32, i32, i32) {
    %c0_i32 = arith.constant 0 : i32
    %c0_i32_0 = arith.constant 0 : i32
    %c0_i32_1 = arith.constant 0 : i32
    %c0_i32_2 = arith.constant 0 : i32
    return %c0_i32, %c0_i32_0, %c0_i32_1 : i32, i32, i32
  }
}

</mosaic_0001>

<bundles_post_ra>
// kernel: _forward.3
= control target key start
LH: loop header
LB: loop body
LE: loop exit
PB: predicated region body
PF: predicated region fallthrough
CT: control target
= control target key end

     0   :  { %vm32_vm0 = vcmask 130048   ;;  %s1199_s0 = inlined_call_operand.vmem [shape: f32[2,8,16], index: 0, kind: input, shape index: {}]   ;;  %s1200_s1 = inlined_call_operand.vmem [shape: f32[16,16], index: 1, kind: input, shape index: {}]   ;;  %s1201_s2 = inlined_call_operand.vmem [shape: f32[1,16], index: 2, kind: input, shape index: {}]   ;;  %s1202_s3 = inlined_call_operand.vmem [shape: f32[16,48], index: 3, kind: input, shape index: {}]   ;;  %s1203_s4 = inlined_call_operand.vmem [shape: f32[1,48], index: 4, kind: input, shape index: {}]   ;;  %s1204_s5 = inlined_call_operand.hbm [shape: f32[2,8,16], index: 5, kind: output, shape index: {}]  }
   0x1   :  { %v24_v0 = vld [vmem:[%s1200_s1 + $0x8] sm:$0xff]  ;;  %v23_v1 = vld [vmem:[%s1200_s1] sm:$0xff] }
   0x2   :  { %v21_v2 = vld [vmem:[%s1199_s0] sm:$0xff]  ;;  %945 = vmatprep.subr.mxu0 %v24_v0 }
   0x3   :  { %949 = vmatprep.mubr.msk.f32.mxu0 %vm32_vm0, %v21_v2 }
   0x4   :  { %10 = vsyncpa [#allocation3], 0  ;;  %946 = vmatpush3.msra.mxu0 %v24_v0  ;;  %v22_v3 = vld [vmem:[%s1199_s0 + $0x8] sm:$0xff]  ;;  %v116_v5 = vld [vmem:[%s1202_s3] sm:$0xff]  ;;  %v1047_v13 = vmov 0.0   ;;  %vm1048_vm1 = vmmov 0  }
   0x5   :  { %947 = vmatprep.subr.mxu0 %v23_v1  ;;  %v117_v4 = vld [vmem:[%s1202_s3 + $0x8] sm:$0xff]  ;;  %v903_v6 = vld [vmem:[%s1201_s2] ss:$0 sm:$0xff]  ;;  %s1049_s3 = smov 112   ;;  %vm209_vm2 = vcmask 64512   ;;  %s1051_s6 = smov 120  }
   0x6   :  { %948 = vmatpush3.msra.mxu0 %v23_v1  ;;  %952 = vmatprep.subr.mxu1 %v117_v4  ;;  %v906_v15 = vld [vmem:[%s1203_s4] ss:$0 sm:$0xff]  ;;  %s1050_s4 = smov 96   ;;  %s1052_s7 = smov 104  }
   0x7   :  { %950 = vmatmul.mubr.msk.f32.vlgmr.msra.gmra.mxu0 %vm32_vm0, %v22_v3  ;;  %953 = vmatpush3.msra.mxu1 %v117_v4  ;;  %s1053_s8 = smov 88   ;;  %s1054_s9 = smov 8  }
   0x8   :  { %954 = vmatprep.subr.mxu1 %v116_v5  ;;  %959 = vmatprep.subr.mxu0 %v1047_v13  ;;  %s1055_s10 = smov [#allocation2]  }
   0x9   :  { %955 = vmatpush3.msra.mxu1 %v116_v5  ;;  %961 = vmatprep.mubr.msk.f32.mxu0 %vm1048_vm1, %v1047_v13  ;;  %s892_s11 = sshll.u32 %s1055_s10, 4  ;;  %s893_s11 = int_to_ptr.vmem [resolvable:$true] %s892_s11 }
   0xa   :  { %964 = vmatprep.subr.mxu1 %v1047_v13  ;;  %s1025_s12 = scalar_lea.vmem %s893_s11, 256  ;;  %p1030_p1 = scmp.lt.s32.totalorder %s893_s11, %s893_s11 }
   0xb   :  { %p1026_p0 = scmp.ne.s32.totalorder %s893_s11, %s1025_s12  ;;  %p1031_p2 = scmp.lt.s32.totalorder %s1025_s12, %s1025_s12 }
   0xd   :  { %p1032_p3 = por %p1031_p2, %p1030_p1 }
   0xf   :  { %p1033_p4 = pnand %p1032_p3, %p1026_p0 }
  0xc7   :  { %v951_v7 = vpop.f32.mrf.mxu0 }
  0xc8   :  { %v111_v8 = vadd.f32 %v951_v7, %v903_v6 }
  0xc9   :  { %v105_v9 = vpop.f32.mrf.mxu0 }
  0xca   :  { %v106_v10 = vadd.f32 %v903_v6, %v105_v9  ;;  %v1112_v12 = vmax.f32 %v111_v8, 0.0 }
  0xcc   :  { %v1110_v11 = vmax.f32 %v106_v10, 0.0 }
  0xce   :  { %956 = vmatprep.mubr.msk.f32.mxu1 %vm32_vm0, %v1110_v11 }
  0xcf   :  { %957 = vmatmul.mubr.msk.f32.vlgmr.msra.gmra.mxu1 %vm32_vm0, %v1112_v12 }
  0xd0   :  { %966 = vmatprep.mubr.msk.f32.mxu1 %vm1048_vm1, %v1047_v13 }
 0x18f   :  { %v958_v14 = vpop.f32.mrf.mxu1 }
 0x190   :  { %v1130_v18 = vadd.f32 %v958_v14, %v906_v15 }
 0x191   :  { %v197_v16 = vpop.f32.mrf.mxu1 }
 0x192   :  { %v1127_v17 = vadd.f32 %v906_v15, %v197_v16 }
 0x194   :  { %207 = vrot.lane.b32.xlu0 %v1127_v17, %s1049_s3 }
 0x198   :  { %285 = vrot.lane.b32.xlu0 %v1130_v18, %s1049_s3 }
 0x206   :  { %v208_v19 = vpop.permute.xlu0 %207 }
 0x207   :  { %960 = vmatpush3.xpose.msk.msra.mxu0 %vm209_vm2, %v208_v19 }
 0x208   :  { %969 = vmatprep.subr.mxu0 %v1047_v13 }
 0x20a   :  { %962 = vmatmul.mubr.msk.f32.vlgmr.msra.gmra.mxu0 %vm209_vm2, %v1127_v17  ;;  %v286_v20 = vpop.permute.xlu0 %285 }
 0x20b   :  { %965 = vmatpush3.xpose.msk.msra.mxu1 %vm209_vm2, %v286_v20  ;;  %971 = vmatprep.mubr.msk.f32.mxu0 %vm1048_vm1, %v1047_v13 }
 0x20c   :  { %974 = vmatprep.subr.mxu1 %v1047_v13 }
 0x20e   :  { %967 = vmatmul.mubr.msk.f32.vlgmr.msra.gmra.mxu1 %vm209_vm2, %v1130_v18 }
 0x20f   :  { %976 = vmatprep.mubr.msk.f32.mxu1 %vm1048_vm1, %v1047_v13 }
 0x2ca   :  { %v280_v21 = vpop.f32.mrf.mxu0 }
 0x2cb   :  { %v361_v22 = vmul.f32 0.35355338, %v280_v21 }
 0x2cc   :  { %v963_v23 = vpop.f32.mrf.mxu0 }
 0x2cd   :  { %v363_v24 = vsel %vm209_vm2, %v361_v22, -inf }
 0x2ce   :  { %364 = vmax.xlane.f32.xlu1 %v363_v24  ;;  %v357_v25 = vpop.f32.mrf.mxu1 }
 0x2cf   :  { %v362_v26 = vmul.f32 0.35355338, %v357_v25 }
 0x2d0   :  { %v968_v27 = vpop.f32.mrf.mxu1 }
 0x2d1   :  { %v366_v28 = vsel %vm209_vm2, %v362_v26, -inf }
 0x2d2   :  { %367 = vmax.xlane.f32.xlu1 %v366_v28 }
 0x357   :  { %v365_v29 = vpop.xlane.xlu1 %364 }
 0x358   :  { %v369_v30 = vsub.f32 %v361_v22, %v365_v29 }
 0x35a   :  { %v371_v31 = vmul.f32 1.442695, %v369_v30 }
 0x35b   :  { %v368_v32 = vpop.xlane.xlu1 %367 }
 0x35c   :  { %1009 = vpow2.f32 %v371_v31  ;;  %v370_v33 = vsub.f32 %v362_v26, %v368_v32 }
 0x35e   :  { %v373_v34 = vmul.f32 1.442695, %v370_v33 }
 0x360   :  { %1011 = vpow2.f32 %v373_v34 }
 0x369   :  { %v1010_v35 = vpop.eup %1009 }
 0x36a   :  { %v375_v36 = vsel %vm209_vm2, %v1010_v35, 0.0 }
 0x36b   :  { %376 = vadd.xlane.f32.xlu0 %v375_v36 }
 0x36d   :  { %v1012_v37 = vpop.eup %1011 }
 0x36e   :  { %v378_v38 = vsel %vm209_vm2, %v1012_v37, 0.0 }
 0x36f   :  { %379 = vadd.xlane.f32.xlu1 %v378_v38 }
 0x380   :  { %385 = vrot.lane.b32.xlu1 %v1127_v17, %s1050_s4 }
 0x381   :  { %537 = vrot.lane.b32.xlu0 %v1127_v17, %s1051_s6 }
 0x384   :  { %461 = vrot.lane.b32.xlu1 %v1130_v18, %s1050_s4 }
 0x388   :  { %539 = vrot.lane.b32.xlu1 %v1127_v17, %s1052_s7 }
 0x38c   :  { %617 = vrot.lane.b32.xlu1 %v1130_v18, %s1052_s7 }
 0x390   :  { %615 = vrot.lane.b32.xlu1 %v1130_v18, %s1051_s6 }
 0x3f4   :  { %v377_v39 = vpop.xlane.xlu0 %376 }
 0x3f5   :  { %1013 = vrcp.f32 %v377_v39 }
 0x3f8   :  { %v380_v40 = vpop.xlane.xlu1 %379  ;;  %v538_v48 = vpop.permute.xlu0 %537 }
 0x3f9   :  { %1015 = vrcp.f32 %v380_v40 }
 0x3fc   :  { %v386_v41 = vpop.permute.xlu1 %385 }
 0x3fd   :  { %970 = vmatpush3.msra.mxu0 %v386_v41 }
 0x3fe   :  { %979 = vmatprep.subr.mxu0 %v1047_v13 }
 0x400   :  { %v462_v42 = vpop.permute.xlu1 %461 }
 0x401   :  { %975 = vmatpush3.msra.mxu1 %v462_v42 }
 0x402   :  { %v1014_v43 = vpop.eup %1013  ;;  %984 = vmatprep.subr.mxu1 %v1047_v13 }
 0x403   :  { %v383_v44 = vmul.f32 %v1014_v43, %v1010_v35 }
 0x404   :  { %v540_v45 = vpop.permute.xlu1 %539 }
 0x405   :  { %972 = vmatmul.mubr.msk.f32.vlgmr.msra.gmra.mxu0 %vm209_vm2, %v383_v44 }
 0x406   :  { %v1016_v46 = vpop.eup %1015  ;;  %980 = vmatpush3.xpose.msk.msra.mxu0 %vm209_vm2, %v540_v45  ;;  %981 = vmatprep.mubr.msk.f32.mxu0 %vm1048_vm1, %v1047_v13 }
 0x407   :  { %v384_v47 = vmul.f32 %v1016_v46, %v1012_v37  ;;  %989 = vmatprep.subr.mxu0 %v1047_v13 }
 0x408   :  { %v618_v49 = vpop.permute.xlu1 %617 }
 0x409   :  { %977 = vmatmul.mubr.msk.f32.vlgmr.msra.gmra.mxu1 %vm209_vm2, %v384_v47  ;;  %982 = vmatmul.mubr.msk.f32.vlgmr.msra.gmra.mxu0 %vm209_vm2, %v538_v48 }
 0x40a   :  { %985 = vmatpush3.xpose.msk.msra.mxu1 %vm209_vm2, %v618_v49  ;;  %986 = vmatprep.mubr.msk.f32.mxu1 %vm1048_vm1, %v1047_v13 }
 0x40b   :  { %994 = vmatprep.subr.mxu1 %v1047_v13  ;;  %991 = vmatprep.mubr.msk.f32.mxu0 %vm1048_vm1, %v1047_v13 }
 0x40c   :  { %v616_v50 = vpop.permute.xlu1 %615 }
 0x40d   :  { %987 = vmatmul.mubr.msk.f32.vlgmr.msra.gmra.mxu1 %vm209_vm2, %v616_v50 }
 0x40e   :  { %996 = vmatprep.mubr.msk.f32.mxu1 %vm1048_vm1, %v1047_v13 }
 0x4c5   :  { %v1175_v51 = vpop.f32.mrf.mxu0 }
 0x4c6   :  { %v458_v30 = vadd.f32 %v1175_v51, %v1110_v11 }
 0x4c7   :  { %v973_v52 = vpop.f32.mrf.mxu0 }
 0x4c9   :  { %v533_v53 = vpop.f32.mrf.mxu1  ;;  %v611_v54 = vpop.f32.mrf.mxu0 }
 0x4ca   :  { %v693_v55 = vmul.f32 0.35355338, %v611_v54  ;;  %v534_v27 = vadd.f32 %v533_v53, %v1112_v12 }
 0x4cb   :  { %v978_v56 = vpop.f32.mrf.mxu1  ;;  %v983_v57 = vpop.f32.mrf.mxu0 }
 0x4cc   :  { %v695_v58 = vsel %vm209_vm2, %v693_v55, -inf }
 0x4cd   :  { %v689_v59 = vpop.f32.mrf.mxu1  ;;  %696 = vmax.xlane.f32.xlu1 %v695_v58 }
 0x4ce   :  { %v694_v60 = vmul.f32 0.35355338, %v689_v59 }
 0x4cf   :  { %v988_v61 = vpop.f32.mrf.mxu1 }
 0x4d0   :  { %v698_v62 = vsel %vm209_vm2, %v694_v60, -inf }
 0x4d1   :  { %699 = vmax.xlane.f32.xlu0 %v698_v62 }
 0x4e7   :  { %796 = vrot.lane.b32.xlu0 %v1130_v18, %s1053_s8 }
 0x556   :  { %v697_v63 = vpop.xlane.xlu1 %696 }
 0x557   :  { %v701_v0 = vsub.f32 %v693_v55, %v697_v63 }
 0x559   :  { %v703_v3 = vmul.f32 1.442695, %v701_v0 }
 0x55a   :  { %v700_v1 = vpop.xlane.xlu0 %699 }
 0x55b   :  { %v702_v2 = vsub.f32 %v694_v60, %v700_v1 }
 0x55d   :  { %v705_v4 = vmul.f32 1.442695, %v702_v2 }
 0x55e   :  { %v797_v5 = vpop.permute.xlu0 %796 }
 0x55f   :  { %1017 = vpow2.f32 %v705_v4  ;;  %995 = vmatpush3.msra.mxu1 %v797_v5 }
 0x560   :  { %1019 = vpow2.f32 %v703_v3 }
 0x56c   :  { %v1018_v6 = vpop.eup %1017 }
 0x56d   :  { %v710_v7 = vsel %vm209_vm2, %v1018_v6, 0.0  ;;  %v1020_v8 = vpop.eup %1019 }
 0x56e   :  { %711 = vadd.xlane.f32.xlu1 %v710_v7  ;;  %v707_v9 = vsel %vm209_vm2, %v1020_v8, 0.0 }
 0x572   :  { %708 = vadd.xlane.f32.xlu1 %v707_v9 }
 0x583   :  { %717 = vrot.lane.b32.xlu1 %v1127_v17, %s1053_s8 }
 0x587   :  { %720 = vrot.lane.b32.xlu1 %v1110_v11, %s1051_s6 }
 0x58b   :  { %799 = vrot.lane.b32.xlu1 %v1112_v12, %s1051_s6 }
 0x5f7   :  { %v712_v10 = vpop.xlane.xlu1 %711 }
 0x5f8   :  { %1021 = vrcp.f32 %v712_v10 }
 0x5fb   :  { %v709_v13 = vpop.xlane.xlu1 %708 }
 0x5fc   :  { %1023 = vrcp.f32 %v709_v13 }
 0x5ff   :  { %v718_v14 = vpop.permute.xlu1 %717 }
 0x600   :  { %990 = vmatpush3.msra.mxu0 %v718_v14 }
 0x603   :  { %v721_v17 = vpop.permute.xlu1 %720 }
 0x605   :  { %v1022_v15 = vpop.eup %1021 }
 0x606   :  { %v716_v16 = vmul.f32 %v1022_v15, %v1018_v6 }
 0x607   :  { %v800_v20 = vpop.permute.xlu1 %799 }
 0x608   :  { %997 = vmatmul.mubr.msk.f32.vlgmr.msra.gmra.mxu1 %vm209_vm2, %v716_v16 }
 0x609   :  { %v1024_v18 = vpop.eup %1023 }
 0x60a   :  { %v715_v19 = vmul.f32 %v1024_v18, %v1020_v8 }
 0x60c   :  { %992 = vmatmul.mubr.msk.f32.vlgmr.msra.gmra.mxu0 %vm209_vm2, %v715_v19 }
 0x6c8   :  { %v871_v21 = vpop.f32.mrf.mxu1 }
 0x6c9   :  { %v872_v22 = vadd.f32 %v871_v21, %v800_v20 }
 0x6ca   :  { %v998_v23 = vpop.f32.mrf.mxu1 }
 0x6cb   :  { %879 = vrot.lane.b32.xlu1 %v872_v22, %s1054_s9 }
 0x6cc   :  { %v792_v24 = vpop.f32.mrf.mxu0 }
 0x6cd   :  { %v793_v25 = vadd.f32 %v792_v24, %v721_v17 }
 0x6ce   :  { %v993_v26 = vpop.f32.mrf.mxu0 }
 0x6cf   :  { %877 = vrot.lane.b32.xlu0 %v793_v25, %s1054_s9 }
 0x73d   :  { %v880_v28 = vpop.permute.xlu1 %879 }
 0x73e   :  { %v884_v29 = vsel %vm209_vm2, %v534_v27, %v880_v28 }
 0x73f   :  { %886 = vst.msk [vmem:[#allocation2 + $0x8] sm:$0xff] %vm32_vm0, %v884_v29 }
 0x741   :  { %v878_v31 = vpop.permute.xlu0 %877 }
 0x742   :  { %v883_v32 = vsel %vm209_vm2, %v458_v30, %v878_v31 }
 0x743   :  { %885 = vst.msk [vmem:[#allocation2] sm:$0xff] %vm32_vm0, %v883_v32 }
 0x744   :  { %1036 = shalt.err (!%p1033_p4)
}
 0x745   :  { %s1056_s13 = smov 128  }
 0x746   :  { %898 = dma.vmem_to_hbm [thread:$0]  %s893_s11, 256, %s1204_s5, [#allocation3], %s1056_s13, %s1056_s13, %s1054_s9  }
 0x747   :  { %1045 = dma.done.wait [#allocation3], 256  }
 0x748   :  { %1046 = vsyncadd [#allocation3], 4294967040 }
 0x749   :  { %902 = vsyncpa [#allocation3], 1 }

// kernel: _forward.2
= control target key start
LH: loop header
LB: loop body
LE: loop exit
PB: predicated region body
PF: predicated region fallthrough
CT: control target
= control target key end

     0   :  { %10 = vsyncpa [#allocation3], 0  ;;  %s1334_s0 = inlined_call_operand.hbm [shape: f32[2,8,32], index: 0, kind: input, shape index: {}]   ;;  %s1335_s1 = inlined_call_operand.hbm [shape: f32[32,32], index: 1, kind: input, shape index: {}]   ;;  %s1336_s2 = inlined_call_operand.vmem [shape: f32[1,32], index: 2, kind: input, shape index: {}]   ;;  %s1337_s3 = inlined_call_operand.hbm [shape: f32[32,96], index: 3, kind: input, shape index: {}]   ;;  %s1338_s4 = inlined_call_operand.vmem [shape: f32[1,96], index: 4, kind: input, shape index: {}]   ;;  %s1339_s5 = inlined_call_operand.hbm [shape: f32[2,8,32], index: 5, kind: output, shape index: {}]  }
   0x1   :  { %11 = vsyncpa [#allocation6], 0 }
   0x2   :  { %12 = vsyncpa [#allocation4], 0  ;;  %s1175_s18 = smov [#allocation5]   ;;  %s1176_s20 = smov [#allocation2]  }
   0x3   :  { %s30_s19 = sshll.u32 %s1175_s18, 4  ;;  %s18_s21 = sshll.u32 %s1176_s20, 4  ;;  %s31_s19 = int_to_ptr.vmem [resolvable:$true] %s30_s19  ;;  %s19_s21 = int_to_ptr.vmem [resolvable:$true] %s18_s21 }
   0x4   :  { %s1097_s22 = scalar_lea.vmem %s31_s19, 512  ;;  %p1102_p1 = scmp.lt.s32.totalorder %s31_s19, %s31_s19 }
   0x5   :  { %p1098_p0 = scmp.ne.s32.totalorder %s31_s19, %s1097_s22  ;;  %p1103_p2 = scmp.lt.s32.totalorder %s1097_s22, %s1097_s22 }
   0x7   :  { %p1104_p3 = por %p1103_p2, %p1102_p1 }
   0x9   :  { %p1105_p4 = pnand %p1104_p3, %p1098_p0 }
   0xb   :  { %1108 = shalt.err (!%p1105_p4)
}
   0xc   :  { %s1177_s23 = smov 128   ;;  %s1178_s24 = smov 8  }
   0xd   :  { %36 = dma.hbm_to_vmem [thread:$0]  %s1335_s1, 512, %s31_s19, [#allocation6], %s1177_s23, %s1177_s23, %s1178_s24  }
   0xe   :  { %s1117_s27 = scalar_lea.vmem %s19_s21, 256  ;;  %p1122_p6 = scmp.lt.s32.totalorder %s19_s21, %s19_s21 }
   0xf   :  { %p1118_p5 = scmp.ne.s32.totalorder %s19_s21, %s1117_s27  ;;  %p1123_p7 = scmp.lt.s32.totalorder %s1117_s27, %s1117_s27 }
  0x11   :  { %p1124_p8 = por %p1123_p7, %p1122_p6 }
  0x13   :  { %p1125_p9 = pnand %p1124_p8, %p1118_p5 }
  0x15   :  { %1128 = shalt.err (!%p1125_p9)
}
  0x16   :  { %24 = dma.hbm_to_vmem [thread:$0]  %s1334_s0, 256, %s19_s21, [#allocation3], %s1177_s23, %s1177_s23, %s1178_s24  }
  0x17   :  { %s1179_s30 = smov [#allocation7]  }
  0x18   :  { %s44_s6 = sshll.u32 %s1179_s30, 4  ;;  %s45_s6 = int_to_ptr.vmem [resolvable:$true] %s44_s6 }
  0x19   :  { %s1137_s7 = scalar_lea.vmem %s45_s6, 512  ;;  %p1142_p11 = scmp.lt.s32.totalorder %s45_s6, %s45_s6 }
  0x1a   :  { %p1138_p10 = scmp.ne.s32.totalorder %s45_s6, %s1137_s7  ;;  %p1143_p12 = scmp.lt.s32.totalorder %s1137_s7, %s1137_s7 }
  0x1c   :  { %p1144_p13 = por %p1143_p12, %p1142_p11 }
  0x1e   :  { %p1145_p0 = pnand %p1144_p13, %p1138_p10 }
  0x20   :  { %1148 = shalt.err (!%p1145_p0)
}
  0x21   :  { %50 = dma.hbm_to_vmem [thread:$0]  %s1337_s3, 512, %s45_s6, [#allocation6], %s1177_s23, %s1177_s23, %s1178_s24  }
  0x22   :  { %1169 = dma.done.wait [#allocation3], 256  }
  0x23   :  { %1170 = vsyncadd [#allocation3], 4294967040 }
  0x24   :  { %1171 = dma.done.wait [#allocation6], 1024  }
  0x25   :  { %1172 = vsyncadd [#allocation6], 4294966272  ;;  %vm75_vm0 = vcmask 261120   ;;  %v67_v0 = vld [vmem:[#allocation5 + $0x18] sm:$0xff]  ;;  %v66_v1 = vld [vmem:[#allocation5 + $0x10] sm:$0xff]  ;;  %v1180_v17 = vmov 0.0  }
  0x26   :  { %997 = vmatprep.subr.mxu0 %v67_v0  ;;  %v62_v2 = vld [vmem:[#allocation2] sm:$0xff]  ;;  %v65_v3 = vld [vmem:[#allocation5 + $0x8] sm:$0xff]  ;;  %v64_v4 = vld [vmem:[#allocation5] sm:$0xff]  ;;  %vm1181_vm1 = vmmov 0   ;;  %s1182_s10 = smov 96   ;;  %vm254_vm2 = vcmask 130048  }
  0x27   :  { %998 = vmatpush3.msra.mxu0 %v67_v0  ;;  %1005 = vmatprep.mubr.msk.f32.mxu0 %vm75_vm0, %v62_v2  ;;  %v63_v5 = vld [vmem:[#allocation2 + $0x8] sm:$0xff]  ;;  %v161_v7 = vld [vmem:[#allocation7 + $0x10] sm:$0xff]  ;;  %v160_v8 = vld [vmem:[#allocation7 + $0x8] sm:$0xff]  ;;  %vm408_vm3 = vcmask 64512   ;;  %s1184_s11 = smov 112   ;;  %s1185_s12 = smov 80  }
  0x28   :  { %999 = vmatprep.subr.mxu0 %v66_v1  ;;  %v162_v6 = vld [vmem:[#allocation7 + $0x18] sm:$0xff]  ;;  %v159_v9 = vld [vmem:[#allocation7] sm:$0xff]  ;;  %v951_v10 = vld [vmem:[%s1336_s2] ss:$0 sm:$0xff]  ;;  %s1186_s13 = smov 48   ;;  %s1187_s14 = smov 16  }
  0x29   :  { %1000 = vmatpush3.msra.mxu0 %v66_v1  ;;  %1008 = vmatprep.subr.mxu1 %v162_v6  ;;  %v954_v19 = vld [vmem:[%s1338_s4] ss:$0 sm:$0xff]  ;;  %s1183_s4 = smov 64   ;;  %s1188_s15 = smov [#allocation8]  }
  0x2a   :  { %1001 = vmatprep.subr.mxu0 %v65_v3  ;;  %1009 = vmatpush3.msra.mxu1 %v162_v6  ;;  %s938_s16 = sshll.u32 %s1188_s15, 4  ;;  %s939_s16 = int_to_ptr.vmem [resolvable:$true] %s938_s16 }
  0x2b   :  { %1002 = vmatpush3.msra.mxu0 %v65_v3  ;;  %1010 = vmatprep.subr.mxu1 %v161_v7  ;;  %s1149_s17 = scalar_lea.vmem %s939_s16, 256  ;;  %p1154_p2 = scmp.lt.s32.totalorder %s939_s16, %s939_s16 }
  0x2c   :  { %1003 = vmatprep.subr.mxu0 %v64_v4  ;;  %1011 = vmatpush3.msra.mxu1 %v161_v7  ;;  %p1150_p1 = scmp.ne.s32.totalorder %s939_s16, %s1149_s17  ;;  %p1155_p3 = scmp.lt.s32.totalorder %s1149_s17, %s1149_s17 }
  0x2d   :  { %1004 = vmatpush3.msra.mxu0 %v64_v4  ;;  %1012 = vmatprep.subr.mxu1 %v160_v8 }
  0x2e   :  { %1006 = vmatmul.mubr.msk.f32.vlgmr.msra.gmra.mxu0 %vm75_vm0, %v63_v5  ;;  %1013 = vmatpush3.msra.mxu1 %v160_v8  ;;  %p1156_p4 = por %p1155_p3, %p1154_p2 }
  0x2f   :  { %1014 = vmatprep.subr.mxu1 %v159_v9  ;;  %1019 = vmatprep.subr.mxu0 %v1180_v17 }
  0x30   :  { %1015 = vmatpush3.msra.mxu1 %v159_v9  ;;  %1021 = vmatprep.mubr.msk.f32.mxu0 %vm1181_vm1, %v1180_v17  ;;  %p1157_p5 = pnand %p1156_p4, %p1150_p1 }
  0x31   :  { %1024 = vmatprep.subr.mxu1 %v1180_v17 }
  0xee   :  { %v1007_v11 = vpop.f32.mrf.mxu0 }
  0xef   :  { %v154_v12 = vadd.f32 %v1007_v11, %v951_v10 }
  0xf0   :  { %v148_v13 = vpop.f32.mrf.mxu0 }
  0xf1   :  { %v149_v14 = vadd.f32 %v951_v10, %v148_v13  ;;  %v1244_v16 = vmax.f32 %v154_v12, 0.0 }
  0xf3   :  { %v1242_v15 = vmax.f32 %v149_v14, 0.0 }
  0xf5   :  { %1016 = vmatprep.mubr.msk.f32.mxu1 %vm75_vm0, %v1242_v15 }
  0xf6   :  { %1017 = vmatmul.mubr.msk.f32.vlgmr.msra.gmra.mxu1 %vm75_vm0, %v1244_v16 }
  0xf7   :  { %1026 = vmatprep.mubr.msk.f32.mxu1 %vm1181_vm1, %v1180_v17 }
 0x1b6   :  { %v1018_v18 = vpop.f32.mrf.mxu1 }
 0x1b7   :  { %v1262_v22 = vadd.f32 %v1018_v18, %v954_v19 }
 0x1b8   :  { %v242_v20 = vpop.f32.mrf.mxu1 }
 0x1b9   :  { %v1259_v21 = vadd.f32 %v954_v19, %v242_v20 }
 0x1bb   :  { %252 = vrot.lane.b32.xlu0 %v1259_v21, %s1182_s10 }
 0x1bf   :  { %330 = vrot.lane.b32.xlu0 %v1262_v22, %s1182_s10 }
 0x22d   :  { %v253_v23 = vpop.permute.xlu0 %252 }
 0x22e   :  { %1020 = vmatpush3.xpose.msk.msra.mxu0 %vm254_vm2, %v253_v23 }
 0x22f   :  { %1029 = vmatprep.subr.mxu0 %v1180_v17 }
 0x231   :  { %1022 = vmatmul.mubr.msk.f32.vlgmr.msra.gmra.mxu0 %vm254_vm2, %v1259_v21  ;;  %v331_v24 = vpop.permute.xlu0 %330 }
 0x232   :  { %1025 = vmatpush3.xpose.msk.msra.mxu1 %vm254_vm2, %v331_v24  ;;  %1031 = vmatprep.mubr.msk.f32.mxu0 %vm1181_vm1, %v1180_v17 }
 0x233   :  { %1034 = vmatprep.subr.mxu1 %v1180_v17 }
 0x235   :  { %1027 = vmatmul.mubr.msk.f32.vlgmr.msra.gmra.mxu1 %vm254_vm2, %v1262_v22 }
 0x236   :  { %1036 = vmatprep.mubr.msk.f32.mxu1 %vm1181_vm1, %v1180_v17 }
 0x2f1   :  { %v325_v25 = vpop.f32.mrf.mxu0 }
 0x2f2   :  { %v406_v26 = vmul.f32 0.25, %v325_v25 }
 0x2f3   :  { %v1023_v27 = vpop.f32.mrf.mxu0 }
 0x2f4   :  { %v409_v28 = vsel %vm408_vm3, %v406_v26, -inf }
 0x2f5   :  { %410 = vmax.xlane.f32.xlu1 %v409_v28  ;;  %v402_v29 = vpop.f32.mrf.mxu1 }
 0x2f6   :  { %v407_v30 = vmul.f32 0.25, %v402_v29 }
 0x2f7   :  { %v1028_v31 = vpop.f32.mrf.mxu1 }
 0x2f8   :  { %v412_v32 = vsel %vm408_vm3, %v407_v30, -inf }
 0x2f9   :  { %413 = vmax.xlane.f32.xlu1 %v412_v32 }
 0x37e   :  { %v411_v33 = vpop.xlane.xlu1 %410 }
 0x37f   :  { %v415_v34 = vsub.f32 %v406_v26, %v411_v33 }
 0x381   :  { %v417_v35 = vmul.f32 1.442695, %v415_v34 }
 0x382   :  { %v414_v36 = vpop.xlane.xlu1 %413 }
 0x383   :  { %1073 = vpow2.f32 %v417_v35  ;;  %v416_v37 = vsub.f32 %v407_v30, %v414_v36 }
 0x385   :  { %v419_v38 = vmul.f32 1.442695, %v416_v37 }
 0x387   :  { %1075 = vpow2.f32 %v419_v38 }
 0x390   :  { %v1074_v39 = vpop.eup %1073 }
 0x391   :  { %v421_v40 = vsel %vm408_vm3, %v1074_v39, 0.0 }
 0x392   :  { %422 = vadd.xlane.f32.xlu0 %v421_v40 }
 0x394   :  { %v1076_v41 = vpop.eup %1075 }
 0x395   :  { %v424_v42 = vsel %vm408_vm3, %v1076_v41, 0.0 }
 0x396   :  { %425 = vadd.xlane.f32.xlu1 %v424_v42 }
 0x3a7   :  { %431 = vrot.lane.b32.xlu1 %v1259_v21, %s1183_s4 }
 0x3a8   :  { %583 = vrot.lane.b32.xlu0 %v1259_v21, %s1184_s11 }
 0x3ab   :  { %507 = vrot.lane.b32.xlu1 %v1262_v22, %s1183_s4 }
 0x3af   :  { %585 = vrot.lane.b32.xlu1 %v1259_v21, %s1185_s12 }
 0x3b3   :  { %663 = vrot.lane.b32.xlu1 %v1262_v22, %s1185_s12 }
 0x3b7   :  { %661 = vrot.lane.b32.xlu1 %v1262_v22, %s1184_s11 }
 0x41b   :  { %v423_v43 = vpop.xlane.xlu0 %422 }
 0x41c   :  { %1077 = vrcp.f32 %v423_v43 }
 0x41f   :  { %v426_v44 = vpop.xlane.xlu1 %425  ;;  %v584_v52 = vpop.permute.xlu0 %583 }
 0x420   :  { %1079 = vrcp.f32 %v426_v44 }
 0x423   :  { %v432_v45 = vpop.permute.xlu1 %431 }
 0x424   :  { %1030 = vmatpush3.msra.mxu0 %v432_v45 }
 0x425   :  { %1039 = vmatprep.subr.mxu0 %v1180_v17 }
 0x427   :  { %v508_v46 = vpop.permute.xlu1 %507 }
 0x428   :  { %1035 = vmatpush3.msra.mxu1 %v508_v46 }
 0x429   :  { %v1078_v47 = vpop.eup %1077  ;;  %1044 = vmatprep.subr.mxu1 %v1180_v17 }
 0x42a   :  { %v429_v48 = vmul.f32 %v1078_v47, %v1074_v39 }
 0x42b   :  { %v586_v49 = vpop.permute.xlu1 %585 }
 0x42c   :  { %1032 = vmatmul.mubr.msk.f32.vlgmr.msra.gmra.mxu0 %vm408_vm3, %v429_v48 }
 0x42d   :  { %v1080_v50 = vpop.eup %1079  ;;  %1040 = vmatpush3.xpose.msk.msra.mxu0 %vm254_vm2, %v586_v49  ;;  %1041 = vmatprep.mubr.msk.f32.mxu0 %vm1181_vm1, %v1180_v17 }
 0x42e   :  { %v430_v51 = vmul.f32 %v1080_v50, %v1076_v41  ;;  %1049 = vmatprep.subr.mxu0 %v1180_v17 }
 0x42f   :  { %v664_v53 = vpop.permute.xlu1 %663 }
 0x430   :  { %1037 = vmatmul.mubr.msk.f32.vlgmr.msra.gmra.mxu1 %vm408_vm3, %v430_v51  ;;  %1042 = vmatmul.mubr.msk.f32.vlgmr.msra.gmra.mxu0 %vm254_vm2, %v584_v52 }
 0x431   :  { %1045 = vmatpush3.xpose.msk.msra.mxu1 %vm254_vm2, %v664_v53  ;;  %1046 = vmatprep.mubr.msk.f32.mxu1 %vm1181_vm1, %v1180_v17 }
 0x432   :  { %1054 = vmatprep.subr.mxu1 %v1180_v17  ;;  %1051 = vmatprep.mubr.msk.f32.mxu0 %vm1181_vm1, %v1180_v17 }
 0x433   :  { %v662_v54 = vpop.permute.xlu1 %661 }
 0x434   :  { %1047 = vmatmul.mubr.msk.f32.vlgmr.msra.gmra.mxu1 %vm254_vm2, %v662_v54 }
 0x435   :  { %1056 = vmatprep.mubr.msk.f32.mxu1 %vm1181_vm1, %v1180_v17 }
 0x4ec   :  { %v1307_v55 = vpop.f32.mrf.mxu0 }
 0x4ed   :  { %v504_v34 = vadd.f32 %v1307_v55, %v1242_v15 }
 0x4ee   :  { %v1033_v56 = vpop.f32.mrf.mxu0 }
 0x4f0   :  { %v579_v57 = vpop.f32.mrf.mxu1  ;;  %v657_v58 = vpop.f32.mrf.mxu0 }
 0x4f1   :  { %v739_v59 = vmul.f32 0.25, %v657_v58  ;;  %v580_v31 = vadd.f32 %v579_v57, %v1244_v16 }
 0x4f2   :  { %v1038_v60 = vpop.f32.mrf.mxu1  ;;  %v1043_v61 = vpop.f32.mrf.mxu0 }
 0x4f3   :  { %v741_v62 = vsel %vm408_vm3, %v739_v59, -inf }
 0x4f4   :  { %v735_v63 = vpop.f32.mrf.mxu1  ;;  %742 = vmax.xlane.f32.xlu1 %v741_v62 }
 0x4f5   :  { %v740_v0 = vmul.f32 0.25, %v735_v63 }
 0x4f6   :  { %v1048_v1 = vpop.f32.mrf.mxu1 }
 0x4f7   :  { %v744_v2 = vsel %vm408_vm3, %v740_v0, -inf }
 0x4f8   :  { %745 = vmax.xlane.f32.xlu0 %v744_v2 }
 0x50e   :  { %842 = vrot.lane.b32.xlu0 %v1262_v22, %s1186_s13 }
 0x57d   :  { %v743_v3 = vpop.xlane.xlu1 %742 }
 0x57e   :  { %v747_v4 = vsub.f32 %v739_v59, %v743_v3 }
 0x580   :  { %v749_v7 = vmul.f32 1.442695, %v747_v4 }
 0x581   :  { %v746_v5 = vpop.xlane.xlu0 %745 }
 0x582   :  { %v748_v6 = vsub.f32 %v740_v0, %v746_v5 }
 0x584   :  { %v751_v8 = vmul.f32 1.442695, %v748_v6 }
 0x585   :  { %v843_v9 = vpop.permute.xlu0 %842 }
 0x586   :  { %1081 = vpow2.f32 %v751_v8  ;;  %1055 = vmatpush3.msra.mxu1 %v843_v9 }
 0x587   :  { %1083 = vpow2.f32 %v749_v7 }
 0x593   :  { %v1082_v10 = vpop.eup %1081 }
 0x594   :  { %v756_v11 = vsel %vm408_vm3, %v1082_v10, 0.0  ;;  %v1084_v12 = vpop.eup %1083 }
 0x595   :  { %757 = vadd.xlane.f32.xlu1 %v756_v11  ;;  %v753_v13 = vsel %vm408_vm3, %v1084_v12, 0.0 }
 0x599   :  { %754 = vadd.xlane.f32.xlu1 %v753_v13 }
 0x5aa   :  { %763 = vrot.lane.b32.xlu1 %v1259_v21, %s1186_s13 }
 0x5ae   :  { %766 = vrot.lane.b32.xlu1 %v1242_v15, %s1184_s11 }
 0x5b2   :  { %845 = vrot.lane.b32.xlu1 %v1244_v16, %s1184_s11 }
 0x61e   :  { %v758_v14 = vpop.xlane.xlu1 %757 }
 0x61f   :  { %1085 = vrcp.f32 %v758_v14 }
 0x622   :  { %v755_v17 = vpop.xlane.xlu1 %754 }
 0x623   :  { %1087 = vrcp.f32 %v755_v17 }
 0x626   :  { %v764_v18 = vpop.permute.xlu1 %763 }
 0x627   :  { %1050 = vmatpush3.msra.mxu0 %v764_v18 }
 0x62a   :  { %v767_v21 = vpop.permute.xlu1 %766 }
 0x62c   :  { %v1086_v19 = vpop.eup %1085 }
 0x62d   :  { %v762_v20 = vmul.f32 %v1086_v19, %v1082_v10 }
 0x62e   :  { %v846_v24 = vpop.permute.xlu1 %845 }
 0x62f   :  { %1057 = vmatmul.mubr.msk.f32.vlgmr.msra.gmra.mxu1 %vm408_vm3, %v762_v20 }
 0x630   :  { %v1088_v22 = vpop.eup %1087 }
 0x631   :  { %v761_v23 = vmul.f32 %v1088_v22, %v1084_v12 }
 0x633   :  { %1052 = vmatmul.mubr.msk.f32.vlgmr.msra.gmra.mxu0 %vm408_vm3, %v761_v23 }
 0x6ef   :  { %v917_v25 = vpop.f32.mrf.mxu1 }
 0x6f0   :  { %v918_v26 = vadd.f32 %v917_v25, %v846_v24 }
 0x6f1   :  { %v1058_v27 = vpop.f32.mrf.mxu1 }
 0x6f2   :  { %925 = vrot.lane.b32.xlu1 %v918_v26, %s1187_s14 }
 0x6f3   :  { %v838_v28 = vpop.f32.mrf.mxu0 }
 0x6f4   :  { %v839_v29 = vadd.f32 %v838_v28, %v767_v21 }
 0x6f5   :  { %v1053_v30 = vpop.f32.mrf.mxu0 }
 0x6f6   :  { %923 = vrot.lane.b32.xlu0 %v839_v29, %s1187_s14 }
 0x764   :  { %v926_v32 = vpop.permute.xlu1 %925 }
 0x765   :  { %v930_v33 = vsel %vm254_vm2, %v580_v31, %v926_v32 }
 0x766   :  { %932 = vst.msk [vmem:[#allocation8 + $0x8] sm:$0xff] %vm75_vm0, %v930_v33 }
 0x768   :  { %v924_v35 = vpop.permute.xlu0 %923 }
 0x769   :  { %v929_v36 = vsel %vm254_vm2, %v504_v34, %v924_v35 }
 0x76a   :  { %931 = vst.msk [vmem:[#allocation8] sm:$0xff] %vm75_vm0, %v929_v36 }
 0x76b   :  { %1160 = shalt.err (!%p1157_p5)
}
 0x76c   :  { %944 = dma.vmem_to_hbm [thread:$0]  %s939_s16, 256, %s1339_s5, [#allocation4], %s1177_s23, %s1177_s23, %s1178_s24  }
 0x76d   :  { %1173 = dma.done.wait [#allocation4], 256  }
 0x76e   :  { %1174 = vsyncadd [#allocation4], 4294967040 }
 0x76f   :  { %948 = vsyncpa [#allocation3], 1 }
 0x770   :  { %949 = vsyncpa [#allocation6], 1 }
 0x771   :  { %950 = vsyncpa [#allocation4], 1 }

</bundles_post_ra>
